<compile_context>
chip_gen: v5e
topology: v5e:2x2
jax: 0.10.0
libtpu: 0.0.40
codegen_flags: <defaults>
</compile_context>

<pallas_src>
import math

import jax
import jax.numpy as jnp
from jax import lax
from jax.experimental import pallas as pl
from jax.experimental.pallas import tpu as pltpu

_LANE = 128
_SINGLE_BUFFER_INVARIANTS = None   # lazily resolved: does pl.Buffered(1) lower?


def _round_up(n, m):
    return -(-n // m) * m


def _cross_product_kernel(x_ref, vt_ref, w_ref, o_ref):
    """One grid step: a batch tile of x against resident V^T / rowsum(V^2)."""
    x = x_ref[...]                       # (bB, D)  f32 or bf16 (streamed)
    vt = vt_ref[...]                     # (K, D)   same dtype (resident)
    w = w_ref[...]                       # (1, D)   f32 == rowsum(V*V) (resident)

    # xvt[k, b] = sum_d V[d, k] * x[b, d] : contraction over D (attention-score
    # pattern). MXU N dim = batch tile -> lane-dense, no transpose of x needed.
    xvt = lax.dot_general(vt, x, (((1,), (1,)), ((), ())),
                          preferred_element_type=jnp.float32)            # (K, bB)
    square_of_sum = jnp.sum(xvt * xvt, axis=0, keepdims=True)            # (1, bB)

    # sum_k sum_d x_d^2 V_dk^2 == (x*x) . rowsum(V*V); computed as a small
    # second MXU contraction so the result stays (1, bB) lane-dense.
    xf = x.astype(jnp.float32)
    sum_of_square = lax.dot_general(w, xf * xf, (((1,), (1,)), ((), ())),
                                    preferred_element_type=jnp.float32)  # (1, bB)

    o_ref[...] = 0.5 * (square_of_sum - sum_of_square)


def _vmem_budget_bytes():
    """~75% of this generation's per-core VMEM (v7x ~48 MiB, v5e/v6e ~96 MiB)."""
    cap = None
    try:
        cap = getattr(pltpu.get_tpu_info(), "vmem_capacity_bytes", None)
    except Exception:
        cap = None
    if not cap or cap <= 0:
        cap = 64 << 20          # conservative default: v7x per-TensorCore VMEM
    return max(int(cap) * 3 // 4, 16 << 20)


def _choose_batch_tile(B, row_hbm_bytes, row_vmem_bytes, vmem_avail, requested=None):
    """Pick the batch tile (multiple of 128 rows -> lane axis of the output)."""
    if requested is not None:
        if requested <= 0 or requested % _LANE != 0:
            raise ValueError("batch_tile must be a positive multiple of 128")
        return requested
    Bp = _round_up(B, _LANE)
    # Target ~4 MiB of streamed x per grid step: amortizes the ~0.35us per-step
    # overhead and sits comfortably past the ~1 MiB HBM-roofline knee.
    bB = _round_up(max((4 << 20) // max(row_hbm_bytes, 1), _LANE), _LANE)
    # Fit the double-buffered x tile + temps + output rows in the VMEM budget.
    bB = min(bB, max((vmem_avail // max(row_vmem_bytes, 1)) // _LANE * _LANE, _LANE))
    bB = min(bB, Bp)
    # Keep >= 2 grid steps when the batch allows it so the "parallel" batch
    # axis can shard across v7x's two TensorCores.
    if Bp >= 2 * _LANE:
        bB = min(bB, _round_up(-(-B // 2), _LANE))
    return max(bB, _LANE)


def cross_product(x, vparam, *, batch_tile=None):
    """x: (B, x_dim), vparam: (x_dim, k) -> (B, 1) f32."""
    B, D = x.shape
    Dv, K = vparam.shape
    assert D == Dv, "x_dim mismatch between input and vparam"

    # Stream x in bf16 when the caller supplies bf16 (mem-bound kernel, AI~K/2
    # flops/byte); everything else computes in f32. Accumulation is f32 always.
    compute_dtype = jnp.bfloat16 if x.dtype == jnp.bfloat16 else jnp.float32
    x = x.astype(compute_dtype)
    vT = jnp.transpose(vparam).astype(compute_dtype)                    # (K, D)
    w = jnp.sum(vparam.astype(jnp.float32) ** 2, axis=1)[None, :]       # (1, D) f32

    x_bytes = x.dtype.itemsize
    d_pad = _round_up(D, _LANE)       # VMEM lane padding of the D axis
    k_pad = _round_up(K, 8)

    # Per-batch-row VMEM cost: 2 x buffers + f32 x^2 temps + (K,bB) matmul
    # result (+ its square) + double-buffered (8-sublane) output row.
    row_vmem = (2 * x_bytes + 8) * d_pad + 8 * k_pad + 64
    # Grid-invariant residents (counted double-buffered in case single
    # buffering is unavailable) + margin for Mosaic internal scratch.
    fixed = 2 * k_pad * d_pad * x_bytes + 2 * 8 * d_pad * 4 + (2 << 20)

    budget = _vmem_budget_bytes()
    bB = _choose_batch_tile(B, D * x_bytes, row_vmem,
                            max(budget - fixed, _LANE * row_vmem), batch_tile)

    if B < bB:
        # Sub-tile batch: pad to one full tile (<=127 zero rows, negligible).
        # Larger batches stream unpadded; the ragged last block's surplus rows
        # compute on whatever is resident and are sliced off below.
        x = jnp.pad(x, ((0, bB - B), (0, 0)))
    grid_n = pl.cdiv(x.shape[0], bB)

    vmem_limit = int(min(budget, max(fixed + row_vmem * bB + (2 << 20), 16 << 20)))

    def launch(single_buffer_invariants):
        if single_buffer_invariants:
            def invariant(shape):
                return pl.BlockSpec(shape, lambda i: (0, 0),
                                    pipeline_mode=pl.Buffered(1))
        else:
            def invariant(shape):
                return pl.BlockSpec(shape, lambda i: (0, 0))

        return pl.pallas_call(
            _cross_product_kernel,
            out_shape=jax.ShapeDtypeStruct((grid_n, bB), jnp.float32),
            grid_spec=pltpu.PrefetchScalarGridSpec(
                num_scalar_prefetch=0,
                grid=(grid_n,),
                in_specs=[
                    pl.BlockSpec((bB, D), lambda i: (i, 0)),   # streamed x tile
                    invariant((K, D)),                         # resident V^T
                    invariant((1, D)),                         # resident rowsum(V^2)
                ],
                out_specs=pl.BlockSpec((1, bB), lambda i: (i, 0)),  # lane-dense row
            ),
            compiler_params=pltpu.CompilerParams(
                dimension_semantics=("parallel",),
                vmem_limit_bytes=vmem_limit,
            ),
            cost_estimate=pl.CostEstimate(
                flops=2 * grid_n * bB * D * (K + 1) + 4 * grid_n * bB * (K + 1),
                transcendentals=0,
                bytes_accessed=(x_bytes * B * D + x_bytes * K * D + 4 * D
                                + 4 * grid_n * bB),
            ),
        )(x, vT, w)

    global _SINGLE_BUFFER_INVARIANTS
    if _SINGLE_BUFFER_INVARIANTS is None:
        try:
            out2d = jax.block_until_ready(launch(True))
            _SINGLE_BUFFER_INVARIANTS = True
        except Exception:
            # Installed JAX rejects pipeline_mode on pallas_call BlockSpecs;
            # fall back to the default double-buffered invariants.
            _SINGLE_BUFFER_INVARIANTS = False
            out2d = launch(False)
    else:
        out2d = launch(_SINGLE_BUFFER_INVARIANTS)

    # (grid, bB) row-major == batch order -> (grid*bB, 1), then drop padding.
    return out2d.reshape(grid_n * bB, 1)[:B]


def cross_product_ref(x, vparam):
    """Pure-JAX reference mirroring the PyTorch forward exactly."""
    xe = x[:, :, None] * vparam[None, :, :]          # == diag_embed(x) @ vparam
    square_of_sum = jnp.sum(xe, axis=1) ** 2
    sum_of_square = jnp.sum(xe ** 2, axis=1)
    return 0.5 * jnp.sum(square_of_sum - sum_of_square, axis=1, keepdims=True)


if __name__ == "__main__":
    key = jax.random.PRNGKey(0)
    kx, kv, kx2 = jax.random.split(key, 3)

    # Small shapes consistent with the module's forward: x is (batch, x_dim).
    batch, x_dim, v_dim = 8, 16, 32

    x = jax.random.normal(kx, (batch, x_dim), dtype=jnp.float32)

    # Deterministic parameter init matching reset_parameter(): U(-stdv, stdv).
    stdv = 1.0 / math.sqrt(v_dim)
    vparam = jax.random.uniform(
        kv, (x_dim, v_dim), dtype=jnp.float32, minval=-stdv, maxval=stdv
    )

    out = jax.block_until_ready(cross_product(x, vparam))
    ref = cross_product_ref(x, vparam)
    assert out.shape == (batch, 1)
    assert jnp.allclose(out, ref, atol=1e-5, rtol=1e-5), (out, ref)

    # Second check: multi-step grid with a ragged (unpadded) last block.
    batch2 = 600
    x2 = jax.random.normal(kx2, (batch2, x_dim), dtype=jnp.float32)
    out2 = jax.block_until_ready(cross_product(x2, vparam))
    ref2 = cross_product_ref(x2, vparam)
    assert out2.shape == (batch2, 1)
    assert jnp.allclose(out2, ref2, atol=1e-4, rtol=1e-4)

    print("KERNEL_OK")
</pallas_src>

<mosaic_0001>
module attributes {stable_mosaic.version = 11 : i64} {
  func.func @_cross_product_kernel(%arg0: i32, %arg1: memref<128x16xf32, #tpu.memory_space<vmem>>, %arg2: memref<32x16xf32, #tpu.memory_space<vmem>>, %arg3: memref<1x16xf32, #tpu.memory_space<vmem>>, %arg4: memref<1x128xf32, #tpu.memory_space<vmem>>) attributes {dimension_semantics = [#tpu.dimension_semantics<parallel>], iteration_bounds = array<i64: 1>, scalar_prefetch = 0 : i64, scratch_operands = 0 : i64, tpu.core_type = #tpu.core_type<tc>, window_params = [{transform_indices = @transform_0, window_bounds = array<i64: 128, 16>}, {pipeline_mode = #tpu.pipeline_mode<synchronous>, transform_indices = @transform_1, window_bounds = array<i64: 32, 16>}, {pipeline_mode = #tpu.pipeline_mode<synchronous>, transform_indices = @transform_2, window_bounds = array<i64: 1, 16>}, {transform_indices = @transform_3, window_bounds = array<i64: 1, 128>}]} {
    %c0 = arith.constant 0 : index
    %c0_0 = arith.constant 0 : index
    %0 = vector.load %arg1[%c0, %c0_0] : memref<128x16xf32, #tpu.memory_space<vmem>>, vector<128x16xf32>
    %c0_1 = arith.constant 0 : index
    %c0_2 = arith.constant 0 : index
    %1 = vector.load %arg2[%c0_1, %c0_2] : memref<32x16xf32, #tpu.memory_space<vmem>>, vector<32x16xf32>
    %c0_3 = arith.constant 0 : index
    %c0_4 = arith.constant 0 : index
    %2 = vector.load %arg3[%c0_3, %c0_4] : memref<1x16xf32, #tpu.memory_space<vmem>>, vector<1x16xf32>
    %cst = arith.constant dense<0.000000e+00> : vector<32x128xf32>
    %3 = tpu.matmul %1, %0, %cst {dimension_numbers = #tpu.dot_dimension_numbers<[1], [1], [0], [0], [0, 0, 1, 0], [], []>} : vector<32x16xf32>, vector<128x16xf32>, vector<32x128xf32> -> vector<32x128xf32>
    %4 = arith.mulf %3, %3 : vector<32x128xf32>
    %cst_5 = arith.constant dense<0.000000e+00> : vector<128xf32>
    %5 = vector.multi_reduction <add>, %4, %cst_5 [0] : vector<32x128xf32> to vector<128xf32>
    %6 = vector.shape_cast %5 : vector<128xf32> to vector<1x128xf32>
    %7 = arith.mulf %0, %0 : vector<128x16xf32>
    %cst_6 = arith.constant dense<0.000000e+00> : vector<1x128xf32>
    %8 = tpu.matmul %2, %7, %cst_6 {dimension_numbers = #tpu.dot_dimension_numbers<[1], [1], [0], [0], [0, 0, 1, 0], [], []>} : vector<1x16xf32>, vector<128x16xf32>, vector<1x128xf32> -> vector<1x128xf32>
    %9 = arith.subf %6, %8 : vector<1x128xf32>
    %cst_7 = arith.constant 5.000000e-01 : f32
    %10 = vector.broadcast %cst_7 : f32 to vector<1x128xf32>
    %11 = arith.mulf %10, %9 : vector<1x128xf32>
    %c0_8 = arith.constant 0 : index
    %c0_9 = arith.constant 0 : index
    %12 = vector.load %arg4[%c0_8, %c0_9] : memref<1x128xf32, #tpu.memory_space<vmem>>, vector<1x128xf32>
    tpu.vector_store %arg4[%c0_8, %c0_9], %11 {strides = array<i32>} : memref<1x128xf32, #tpu.memory_space<vmem>>, vector<1x128xf32>,
    return
  }
  func.func @transform_0(%arg0: i32) -> (i32, i32) {
    %c0_i32 = arith.constant 0 : i32
    %c0_i32_0 = arith.constant 0 : i32
    return %arg0, %c0_i32 : i32, i32
  }
  func.func @transform_1(%arg0: i32) -> (i32, i32) {
    %c0_i32 = arith.constant 0 : i32
    %c0_i32_0 = arith.constant 0 : i32
    %c0_i32_1 = arith.constant 0 : i32
    return %c0_i32, %c0_i32_0 : i32, i32
  }
  func.func @transform_2(%arg0: i32) -> (i32, i32) {
    %c0_i32 = arith.constant 0 : i32
    %c0_i32_0 = arith.constant 0 : i32
    %c0_i32_1 = arith.constant 0 : i32
    return %c0_i32, %c0_i32_0 : i32, i32
  }
  func.func @transform_3(%arg0: i32) -> (i32, i32) {
    %c0_i32 = arith.constant 0 : i32
    %c0_i32_0 = arith.constant 0 : i32
    return %arg0, %c0_i32 : i32, i32
  }
}

module attributes {stable_mosaic.version = 11 : i64} {
  func.func @_cross_product_kernel(%arg0: i32, %arg1: memref<128x16xf32, #tpu.memory_space<vmem>>, %arg2: memref<32x16xf32, #tpu.memory_space<vmem>>, %arg3: memref<1x16xf32, #tpu.memory_space<vmem>>, %arg4: memref<1x128xf32, #tpu.memory_space<vmem>>) attributes {dimension_semantics = [#tpu.dimension_semantics<parallel>], iteration_bounds = array<i64: 1>, scalar_prefetch = 0 : i64, scratch_operands = 0 : i64, tpu.core_type = #tpu.core_type<tc>, window_params = [{transform_indices = @transform_0, window_bounds = array<i64: 128, 16>}, {pipeline_mode = #tpu.pipeline_mode<synchronous>, transform_indices = @transform_1, window_bounds = array<i64: 32, 16>}, {pipeline_mode = #tpu.pipeline_mode<synchronous>, transform_indices = @transform_2, window_bounds = array<i64: 1, 16>}, {transform_indices = @transform_3, window_bounds = array<i64: 1, 128>}]} {
    %c0 = arith.constant 0 : index
    %c0_0 = arith.constant 0 : index
    %0 = vector.load %arg1[%c0, %c0_0] : memref<128x16xf32, #tpu.memory_space<vmem>>, vector<128x16xf32>
    %c0_1 = arith.constant 0 : index
    %c0_2 = arith.constant 0 : index
    %1 = vector.load %arg2[%c0_1, %c0_2] : memref<32x16xf32, #tpu.memory_space<vmem>>, vector<32x16xf32>
    %c0_3 = arith.constant 0 : index
    %c0_4 = arith.constant 0 : index
    %2 = vector.load %arg3[%c0_3, %c0_4] : memref<1x16xf32, #tpu.memory_space<vmem>>, vector<1x16xf32>
    %cst = arith.constant dense<0.000000e+00> : vector<32x128xf32>
    %3 = tpu.matmul %1, %0, %cst {dimension_numbers = #tpu.dot_dimension_numbers<[1], [1], [0], [0], [0, 0, 1, 0], [], []>} : vector<32x16xf32>, vector<128x16xf32>, vector<32x128xf32> -> vector<32x128xf32>
    %4 = arith.mulf %3, %3 : vector<32x128xf32>
    %cst_5 = arith.constant dense<0.000000e+00> : vector<128xf32>
    %5 = vector.multi_reduction <add>, %4, %cst_5 [0] : vector<32x128xf32> to vector<128xf32>
    %6 = vector.shape_cast %5 : vector<128xf32> to vector<1x128xf32>
    %7 = arith.mulf %0, %0 : vector<128x16xf32>
    %cst_6 = arith.constant dense<0.000000e+00> : vector<1x128xf32>
    %8 = tpu.matmul %2, %7, %cst_6 {dimension_numbers = #tpu.dot_dimension_numbers<[1], [1], [0], [0], [0, 0, 1, 0], [], []>} : vector<1x16xf32>, vector<128x16xf32>, vector<1x128xf32> -> vector<1x128xf32>
    %9 = arith.subf %6, %8 : vector<1x128xf32>
    %cst_7 = arith.constant 5.000000e-01 : f32
    %10 = vector.broadcast %cst_7 : f32 to vector<1x128xf32>
    %11 = arith.mulf %10, %9 : vector<1x128xf32>
    %c0_8 = arith.constant 0 : index
    %c0_9 = arith.constant 0 : index
    %12 = vector.load %arg4[%c0_8, %c0_9] : memref<1x128xf32, #tpu.memory_space<vmem>>, vector<1x128xf32>
    tpu.vector_store %arg4[%c0_8, %c0_9], %11 {strides = array<i32>} : memref<1x128xf32, #tpu.memory_space<vmem>>, vector<1x128xf32>,
    return
  }
  func.func @transform_0(%arg0: i32) -> (i32, i32) {
    %c0_i32 = arith.constant 0 : i32
    %c0_i32_0 = arith.constant 0 : i32
    return %arg0, %c0_i32 : i32, i32
  }
  func.func @transform_1(%arg0: i32) -> (i32, i32) {
    %c0_i32 = arith.constant 0 : i32
    %c0_i32_0 = arith.constant 0 : i32
    %c0_i32_1 = arith.constant 0 : i32
    return %c0_i32, %c0_i32_0 : i32, i32
  }
  func.func @transform_2(%arg0: i32) -> (i32, i32) {
    %c0_i32 = arith.constant 0 : i32
    %c0_i32_0 = arith.constant 0 : i32
    %c0_i32_1 = arith.constant 0 : i32
    return %c0_i32, %c0_i32_0 : i32, i32
  }
  func.func @transform_3(%arg0: i32) -> (i32, i32) {
    %c0_i32 = arith.constant 0 : i32
    %c0_i32_0 = arith.constant 0 : i32
    return %arg0, %c0_i32 : i32, i32
  }
}

</mosaic_0001>

<bundles_post_ra>
// kernel: tpu_custom_call.1
= control target key start
LH: loop header
LB: loop body
LE: loop exit
PB: predicated region body
PF: predicated region fallthrough
CT: control target
= control target key end

     0   :  { %vm36_vm0 = vcmask 130048   ;;  %s497_s0 = inlined_call_operand.vmem [shape: f32[128,16], index: 0, kind: input, shape index: {}]   ;;  %s498_s1 = inlined_call_operand.vmem [shape: f32[32,16], index: 1, kind: input, shape index: {}]   ;;  %s499_s2 = inlined_call_operand.vmem [shape: f32[1,16], index: 2, kind: input, shape index: {}]   ;;  %s500_s3 = inlined_call_operand.hbm [shape: f32[1,128], index: 3, kind: output, shape index: {}]  }
   0x1   :  { %v30_v0 = vld [vmem:[%s497_s0 + $0x78] sm:$0xff]  ;;  %v29_v2 = vld [vmem:[%s497_s0 + $0x70] sm:$0xff] }
   0x2   :  { %282 = vmatpush.xpose.msk.msra.mxu2 %vm36_vm0, %v30_v0  ;;  %283 = vmatpush.xpose.msk.msra.mxu3 %vm36_vm0, %v30_v0  ;;  %v154_v1 = vmul.f32 %v30_v0, %v30_v0  ;;  %v153_v3 = vmul.f32 %v29_v2, %v29_v2 }
   0x3   :  { %245 = vmatpush.xpose.msk.msra.mxu0 %vm36_vm0, %v30_v0 }
   0x4   :  { %265 = vmatpush.xpose.msk.msra.mxu1 %vm36_vm0, %v154_v1 }
   0x5   :  { %8 = vsyncpa [#allocation3], 0  ;;  %v28_v4 = vld [vmem:[%s497_s0 + $0x68] sm:$0xff]  ;;  %v27_v6 = vld [vmem:[%s497_s0 + $0x60] sm:$0xff]  ;;  %s236_s28 = sshll.u32 %s500_s3, 4  ;;  %s237_s28 = int_to_ptr.hbm [resolvable:$true] %s236_s28 }
   0x6   :  { %284 = vmatpush.xpose.msk.msra.mxu2 %vm36_vm0, %v29_v2  ;;  %285 = vmatpush.xpose.msk.msra.mxu3 %vm36_vm0, %v29_v2  ;;  %v152_v5 = vmul.f32 %v28_v4, %v28_v4  ;;  %v151_v7 = vmul.f32 %v27_v6, %v27_v6  ;;  %v26_v8 = vld [vmem:[%s497_s0 + $0x58] sm:$0xff]  ;;  %v25_v10 = vld [vmem:[%s497_s0 + $0x50] sm:$0xff]  ;;  %v24_v12 = vld [vmem:[%s497_s0 + $0x48] sm:$0xff] }
   0x7   :  { %246 = vmatpush.xpose.msk.msra.mxu0 %vm36_vm0, %v29_v2  ;;  %v150_v9 = vmul.f32 %v26_v8, %v26_v8  ;;  %v149_v11 = vmul.f32 %v25_v10, %v25_v10  ;;  %v148_v13 = vmul.f32 %v24_v12, %v24_v12  ;;  %v23_v14 = vld [vmem:[%s497_s0 + $0x40] sm:$0xff]  ;;  %v22_v16 = vld [vmem:[%s497_s0 + $0x38] sm:$0xff]  ;;  %v21_v18 = vld [vmem:[%s497_s0 + $0x30] sm:$0xff] }
   0x8   :  { %266 = vmatpush.xpose.msk.msra.mxu1 %vm36_vm0, %v153_v3  ;;  %v147_v15 = vmul.f32 %v23_v14, %v23_v14  ;;  %v146_v17 = vmul.f32 %v22_v16, %v22_v16  ;;  %v145_v19 = vmul.f32 %v21_v18, %v21_v18  ;;  %v20_v20 = vld [vmem:[%s497_s0 + $0x28] sm:$0xff]  ;;  %v19_v22 = vld [vmem:[%s497_s0 + $0x20] sm:$0xff]  ;;  %v18_v24 = vld [vmem:[%s497_s0 + $0x18] sm:$0xff] }
   0x9   :  { %v144_v21 = vmul.f32 %v20_v20, %v20_v20  ;;  %v143_v23 = vmul.f32 %v19_v22, %v19_v22  ;;  %v142_v25 = vmul.f32 %v18_v24, %v18_v24  ;;  %v17_v26 = vld [vmem:[%s497_s0 + $0x10] sm:$0xff]  ;;  %v16_v28 = vld [vmem:[%s497_s0 + $0x8] sm:$0xff]  ;;  %v15_v30 = vld [vmem:[%s497_s0] sm:$0xff] }
   0xa   :  { %286 = vmatpush.xpose.msk.msra.mxu2 %vm36_vm0, %v28_v4  ;;  %287 = vmatpush.xpose.msk.msra.mxu3 %vm36_vm0, %v28_v4  ;;  %v141_v27 = vmul.f32 %v17_v26, %v17_v26  ;;  %v140_v29 = vmul.f32 %v16_v28, %v16_v28  ;;  %v139_v31 = vmul.f32 %v15_v30, %v15_v30  ;;  %v32_v32 = vld [vmem:[%s498_s1 + $0x8] sm:$0xff]  ;;  %v33_v33 = vld [vmem:[%s498_s1 + $0x10] sm:$0xff]  ;;  %v31_v34 = vld [vmem:[%s498_s1] sm:$0xff] }
   0xb   :  { %247 = vmatpush.xpose.msk.msra.mxu0 %vm36_vm0, %v28_v4  ;;  %v35_v35 = vld [vmem:[%s499_s2] sm:$0x1]  ;;  %v34_v36 = vld [vmem:[%s498_s1 + $0x18] sm:$0xff]  ;;  %s341_s1 = smov [#allocation2]  }
   0xc   :  { %267 = vmatpush.xpose.msk.msra.mxu1 %vm36_vm0, %v152_v5  ;;  %s234_s2 = sshll.u32 %s341_s1, 4  ;;  %s235_s2 = int_to_ptr.vmem [resolvable:$true] %s234_s2 }
   0xe   :  { %288 = vmatpush.xpose.msk.msra.mxu2 %vm36_vm0, %v27_v6  ;;  %289 = vmatpush.xpose.msk.msra.mxu3 %vm36_vm0, %v27_v6 }
   0xf   :  { %248 = vmatpush.xpose.msk.msra.mxu0 %vm36_vm0, %v27_v6 }
  0x10   :  { %268 = vmatpush.xpose.msk.msra.mxu1 %vm36_vm0, %v151_v7 }
  0x12   :  { %290 = vmatpush.xpose.msk.msra.mxu2 %vm36_vm0, %v26_v8  ;;  %291 = vmatpush.xpose.msk.msra.mxu3 %vm36_vm0, %v26_v8 }
  0x13   :  { %249 = vmatpush.xpose.msk.msra.mxu0 %vm36_vm0, %v26_v8 }
  0x14   :  { %269 = vmatpush.xpose.msk.msra.mxu1 %vm36_vm0, %v150_v9 }
  0x16   :  { %292 = vmatpush.xpose.msk.msra.mxu2 %vm36_vm0, %v25_v10  ;;  %293 = vmatpush.xpose.msk.msra.mxu3 %vm36_vm0, %v25_v10 }
  0x17   :  { %250 = vmatpush.xpose.msk.msra.mxu0 %vm36_vm0, %v25_v10 }
  0x18   :  { %270 = vmatpush.xpose.msk.msra.mxu1 %vm36_vm0, %v149_v11 }
  0x1a   :  { %294 = vmatpush.xpose.msk.msra.mxu2 %vm36_vm0, %v24_v12  ;;  %295 = vmatpush.xpose.msk.msra.mxu3 %vm36_vm0, %v24_v12 }
  0x1b   :  { %251 = vmatpush.xpose.msk.msra.mxu0 %vm36_vm0, %v24_v12 }
  0x1c   :  { %271 = vmatpush.xpose.msk.msra.mxu1 %vm36_vm0, %v148_v13 }
  0x1e   :  { %296 = vmatpush.xpose.msk.msra.mxu2 %vm36_vm0, %v23_v14  ;;  %297 = vmatpush.xpose.msk.msra.mxu3 %vm36_vm0, %v23_v14 }
  0x1f   :  { %252 = vmatpush.xpose.msk.msra.mxu0 %vm36_vm0, %v23_v14 }
  0x20   :  { %272 = vmatpush.xpose.msk.msra.mxu1 %vm36_vm0, %v147_v15 }
  0x22   :  { %298 = vmatpush.xpose.msk.msra.mxu2 %vm36_vm0, %v22_v16  ;;  %299 = vmatpush.xpose.msk.msra.mxu3 %vm36_vm0, %v22_v16 }
  0x23   :  { %253 = vmatpush.xpose.msk.msra.mxu0 %vm36_vm0, %v22_v16 }
  0x24   :  { %273 = vmatpush.xpose.msk.msra.mxu1 %vm36_vm0, %v146_v17 }
  0x26   :  { %300 = vmatpush.xpose.msk.msra.mxu2 %vm36_vm0, %v21_v18  ;;  %301 = vmatpush.xpose.msk.msra.mxu3 %vm36_vm0, %v21_v18 }
  0x27   :  { %254 = vmatpush.xpose.msk.msra.mxu0 %vm36_vm0, %v21_v18 }
  0x28   :  { %274 = vmatpush.xpose.msk.msra.mxu1 %vm36_vm0, %v145_v19 }
  0x2a   :  { %302 = vmatpush.xpose.msk.msra.mxu2 %vm36_vm0, %v20_v20  ;;  %303 = vmatpush.xpose.msk.msra.mxu3 %vm36_vm0, %v20_v20 }
  0x2b   :  { %255 = vmatpush.xpose.msk.msra.mxu0 %vm36_vm0, %v20_v20 }
  0x2c   :  { %275 = vmatpush.xpose.msk.msra.mxu1 %vm36_vm0, %v144_v21 }
  0x2e   :  { %304 = vmatpush.xpose.msk.msra.mxu2 %vm36_vm0, %v19_v22  ;;  %305 = vmatpush.xpose.msk.msra.mxu3 %vm36_vm0, %v19_v22 }
  0x2f   :  { %256 = vmatpush.xpose.msk.msra.mxu0 %vm36_vm0, %v19_v22 }
  0x30   :  { %276 = vmatpush.xpose.msk.msra.mxu1 %vm36_vm0, %v143_v23 }
  0x32   :  { %306 = vmatpush.xpose.msk.msra.mxu2 %vm36_vm0, %v18_v24  ;;  %307 = vmatpush.xpose.msk.msra.mxu3 %vm36_vm0, %v18_v24 }
  0x33   :  { %257 = vmatpush.xpose.msk.msra.mxu0 %vm36_vm0, %v18_v24 }
  0x34   :  { %277 = vmatpush.xpose.msk.msra.mxu1 %vm36_vm0, %v142_v25 }
  0x36   :  { %308 = vmatpush.xpose.msk.msra.mxu2 %vm36_vm0, %v17_v26  ;;  %309 = vmatpush.xpose.msk.msra.mxu3 %vm36_vm0, %v17_v26 }
  0x37   :  { %258 = vmatpush.xpose.msk.msra.mxu0 %vm36_vm0, %v17_v26 }
  0x38   :  { %278 = vmatpush.xpose.msk.msra.mxu1 %vm36_vm0, %v141_v27 }
  0x3a   :  { %310 = vmatpush.xpose.msk.msra.mxu2 %vm36_vm0, %v16_v28  ;;  %311 = vmatpush.xpose.msk.msra.mxu3 %vm36_vm0, %v16_v28 }
  0x3b   :  { %259 = vmatpush.xpose.msk.msra.mxu0 %vm36_vm0, %v16_v28 }
  0x3c   :  { %279 = vmatpush.xpose.msk.msra.mxu1 %vm36_vm0, %v140_v29 }
  0x3e   :  { %312 = vmatpush.xpose.msk.msra.mxu2 %vm36_vm0, %v15_v30  ;;  %313 = vmatpush.xpose.msk.msra.mxu3 %vm36_vm0, %v15_v30 }
  0x3f   :  { %260 = vmatpush.xpose.msk.msra.mxu0 %vm36_vm0, %v15_v30 }
  0x40   :  { %280 = vmatpush.xpose.msk.msra.mxu1 %vm36_vm0, %v139_v31 }
  0x41   :  { %262 = vmatmul.msk.f32.vlgmr.msra.gmra.mxu2 %vm36_vm0, %v32_v32  ;;  %263 = vmatmul.msk.f32.vlgmr.msra.gmra.mxu3 %vm36_vm0, %v33_v33 }
  0x42   :  { %261 = vmatmul.msk.f32.vlgmr.msra.gmra.mxu0 %vm36_vm0, %v31_v34 }
  0x43   :  { %281 = vmatmul.msk.f32.vlgmr.msra.gmra.mxu1 %vm36_vm0, %v35_v35 }
  0x49   :  { %264 = vmatmul.msk.f32.gmra.mxu3 %vm36_vm0, %v34_v36 }
  0xbf   :  { %v114_v37 = vpop.f32.mrf.mxu0 }
  0xc0   :  { %v126_v40 = vmul.f32 %v114_v37, %v114_v37  ;;  %v223_v53 = vpop.f32.mrf.mxu1 }
  0xc4   :  { %v117_v38 = vpop.f32.mrf.mxu2  ;;  %v120_v39 = vpop.f32.mrf.mxu3 }
  0xc5   :  { %v127_v41 = vmul.f32 %v117_v38, %v117_v38  ;;  %v128_v43 = vmul.f32 %v120_v39, %v120_v39 }
  0xc7   :  { %v130_v42 = vadd.f32 %v127_v41, %v126_v40 }
  0xc9   :  { %v131_v45 = vadd.f32 %v130_v42, %v128_v43 }
  0xcc   :  { %v123_v44 = vpop.f32.mrf.mxu3 }
  0xcd   :  { %v129_v46 = vmul.f32 %v123_v44, %v123_v44 }
  0xcf   :  { %v132_v47 = vadd.f32 %v131_v45, %v129_v46 }
  0xd1   :  { %v133_v48 = vrot.slane %v132_v47, 4 }
  0xd3   :  { %v134_v49 = vadd.f32 %v133_v48, %v132_v47 }
  0xd5   :  { %v135_v50 = vrot.slane %v134_v49, 2 }
  0xd7   :  { %v136_v51 = vadd.f32 %v135_v50, %v134_v49 }
  0xd9   :  { %v137_v52 = vrot.slane %v136_v51, 1 }
  0xdb   :  { %v138_v54 = vadd.f32 %v137_v52, %v136_v51 }
  0xdd   :  { %v226_v55 = vsub.f32 %v138_v54, %v223_v53 }
  0xdf   :  { %v227_v56 = vmul.f32 0.5, %v226_v55 }
  0xe1   :  { %228 = vst [vmem:[#allocation2] sm:$0x1] %v227_v56 }
  0xe2   :  { %239 = dma.vmem_to_hbm [thread:$0]  %s235_s2, 16, %s237_s28, [#allocation3]  }
  0xe3   :  { %339 = dma.done.wait [#allocation3], 16  }
  0xe4   :  { %340 = vsyncadd [#allocation3], 4294967280 }
  0xe5   :  { %244 = vsyncpa [#allocation3], 1 }

// kernel: tpu_custom_call.1
= control target key start
LH: loop header
LB: loop body
LE: loop exit
PB: predicated region body
PF: predicated region fallthrough
CT: control target
= control target key end

     0   :  { %vm36_vm0 = vcmask 130048   ;;  %s497_s0 = inlined_call_operand.vmem [shape: f32[128,16], index: 0, kind: input, shape index: {}]   ;;  %s498_s1 = inlined_call_operand.vmem [shape: f32[32,16], index: 1, kind: input, shape index: {}]   ;;  %s499_s2 = inlined_call_operand.vmem [shape: f32[1,16], index: 2, kind: input, shape index: {}]   ;;  %s500_s3 = inlined_call_operand.hbm [shape: f32[1,128], index: 3, kind: output, shape index: {}]  }
   0x1   :  { %v30_v0 = vld [vmem:[%s497_s0 + $0x78] sm:$0xff]  ;;  %v29_v2 = vld [vmem:[%s497_s0 + $0x70] sm:$0xff] }
   0x2   :  { %282 = vmatpush.xpose.msk.msra.mxu2 %vm36_vm0, %v30_v0  ;;  %283 = vmatpush.xpose.msk.msra.mxu3 %vm36_vm0, %v30_v0  ;;  %v154_v1 = vmul.f32 %v30_v0, %v30_v0  ;;  %v153_v3 = vmul.f32 %v29_v2, %v29_v2 }
   0x3   :  { %245 = vmatpush.xpose.msk.msra.mxu0 %vm36_vm0, %v30_v0 }
   0x4   :  { %265 = vmatpush.xpose.msk.msra.mxu1 %vm36_vm0, %v154_v1 }
   0x5   :  { %8 = vsyncpa [#allocation3], 0  ;;  %v28_v4 = vld [vmem:[%s497_s0 + $0x68] sm:$0xff]  ;;  %v27_v6 = vld [vmem:[%s497_s0 + $0x60] sm:$0xff]  ;;  %s236_s28 = sshll.u32 %s500_s3, 4  ;;  %s237_s28 = int_to_ptr.hbm [resolvable:$true] %s236_s28 }
   0x6   :  { %284 = vmatpush.xpose.msk.msra.mxu2 %vm36_vm0, %v29_v2  ;;  %285 = vmatpush.xpose.msk.msra.mxu3 %vm36_vm0, %v29_v2  ;;  %v152_v5 = vmul.f32 %v28_v4, %v28_v4  ;;  %v151_v7 = vmul.f32 %v27_v6, %v27_v6  ;;  %v26_v8 = vld [vmem:[%s497_s0 + $0x58] sm:$0xff]  ;;  %v25_v10 = vld [vmem:[%s497_s0 + $0x50] sm:$0xff]  ;;  %v24_v12 = vld [vmem:[%s497_s0 + $0x48] sm:$0xff] }
   0x7   :  { %246 = vmatpush.xpose.msk.msra.mxu0 %vm36_vm0, %v29_v2  ;;  %v150_v9 = vmul.f32 %v26_v8, %v26_v8  ;;  %v149_v11 = vmul.f32 %v25_v10, %v25_v10  ;;  %v148_v13 = vmul.f32 %v24_v12, %v24_v12  ;;  %v23_v14 = vld [vmem:[%s497_s0 + $0x40] sm:$0xff]  ;;  %v22_v16 = vld [vmem:[%s497_s0 + $0x38] sm:$0xff]  ;;  %v21_v18 = vld [vmem:[%s497_s0 + $0x30] sm:$0xff] }
   0x8   :  { %266 = vmatpush.xpose.msk.msra.mxu1 %vm36_vm0, %v153_v3  ;;  %v147_v15 = vmul.f32 %v23_v14, %v23_v14  ;;  %v146_v17 = vmul.f32 %v22_v16, %v22_v16  ;;  %v145_v19 = vmul.f32 %v21_v18, %v21_v18  ;;  %v20_v20 = vld [vmem:[%s497_s0 + $0x28] sm:$0xff]  ;;  %v19_v22 = vld [vmem:[%s497_s0 + $0x20] sm:$0xff]  ;;  %v18_v24 = vld [vmem:[%s497_s0 + $0x18] sm:$0xff] }
   0x9   :  { %v144_v21 = vmul.f32 %v20_v20, %v20_v20  ;;  %v143_v23 = vmul.f32 %v19_v22, %v19_v22  ;;  %v142_v25 = vmul.f32 %v18_v24, %v18_v24  ;;  %v17_v26 = vld [vmem:[%s497_s0 + $0x10] sm:$0xff]  ;;  %v16_v28 = vld [vmem:[%s497_s0 + $0x8] sm:$0xff]  ;;  %v15_v30 = vld [vmem:[%s497_s0] sm:$0xff] }
   0xa   :  { %286 = vmatpush.xpose.msk.msra.mxu2 %vm36_vm0, %v28_v4  ;;  %287 = vmatpush.xpose.msk.msra.mxu3 %vm36_vm0, %v28_v4  ;;  %v141_v27 = vmul.f32 %v17_v26, %v17_v26  ;;  %v140_v29 = vmul.f32 %v16_v28, %v16_v28  ;;  %v139_v31 = vmul.f32 %v15_v30, %v15_v30  ;;  %v32_v32 = vld [vmem:[%s498_s1 + $0x8] sm:$0xff]  ;;  %v33_v33 = vld [vmem:[%s498_s1 + $0x10] sm:$0xff]  ;;  %v31_v34 = vld [vmem:[%s498_s1] sm:$0xff] }
   0xb   :  { %247 = vmatpush.xpose.msk.msra.mxu0 %vm36_vm0, %v28_v4  ;;  %v35_v35 = vld [vmem:[%s499_s2] sm:$0x1]  ;;  %v34_v36 = vld [vmem:[%s498_s1 + $0x18] sm:$0xff]  ;;  %s341_s1 = smov [#allocation2]  }
   0xc   :  { %267 = vmatpush.xpose.msk.msra.mxu1 %vm36_vm0, %v152_v5  ;;  %s234_s2 = sshll.u32 %s341_s1, 4  ;;  %s235_s2 = int_to_ptr.vmem [resolvable:$true] %s234_s2 }
   0xe   :  { %288 = vmatpush.xpose.msk.msra.mxu2 %vm36_vm0, %v27_v6  ;;  %289 = vmatpush.xpose.msk.msra.mxu3 %vm36_vm0, %v27_v6 }
   0xf   :  { %248 = vmatpush.xpose.msk.msra.mxu0 %vm36_vm0, %v27_v6 }
  0x10   :  { %268 = vmatpush.xpose.msk.msra.mxu1 %vm36_vm0, %v151_v7 }
  0x12   :  { %290 = vmatpush.xpose.msk.msra.mxu2 %vm36_vm0, %v26_v8  ;;  %291 = vmatpush.xpose.msk.msra.mxu3 %vm36_vm0, %v26_v8 }
  0x13   :  { %249 = vmatpush.xpose.msk.msra.mxu0 %vm36_vm0, %v26_v8 }
  0x14   :  { %269 = vmatpush.xpose.msk.msra.mxu1 %vm36_vm0, %v150_v9 }
  0x16   :  { %292 = vmatpush.xpose.msk.msra.mxu2 %vm36_vm0, %v25_v10  ;;  %293 = vmatpush.xpose.msk.msra.mxu3 %vm36_vm0, %v25_v10 }
  0x17   :  { %250 = vmatpush.xpose.msk.msra.mxu0 %vm36_vm0, %v25_v10 }
  0x18   :  { %270 = vmatpush.xpose.msk.msra.mxu1 %vm36_vm0, %v149_v11 }
  0x1a   :  { %294 = vmatpush.xpose.msk.msra.mxu2 %vm36_vm0, %v24_v12  ;;  %295 = vmatpush.xpose.msk.msra.mxu3 %vm36_vm0, %v24_v12 }
  0x1b   :  { %251 = vmatpush.xpose.msk.msra.mxu0 %vm36_vm0, %v24_v12 }
  0x1c   :  { %271 = vmatpush.xpose.msk.msra.mxu1 %vm36_vm0, %v148_v13 }
  0x1e   :  { %296 = vmatpush.xpose.msk.msra.mxu2 %vm36_vm0, %v23_v14  ;;  %297 = vmatpush.xpose.msk.msra.mxu3 %vm36_vm0, %v23_v14 }
  0x1f   :  { %252 = vmatpush.xpose.msk.msra.mxu0 %vm36_vm0, %v23_v14 }
  0x20   :  { %272 = vmatpush.xpose.msk.msra.mxu1 %vm36_vm0, %v147_v15 }
  0x22   :  { %298 = vmatpush.xpose.msk.msra.mxu2 %vm36_vm0, %v22_v16  ;;  %299 = vmatpush.xpose.msk.msra.mxu3 %vm36_vm0, %v22_v16 }
  0x23   :  { %253 = vmatpush.xpose.msk.msra.mxu0 %vm36_vm0, %v22_v16 }
  0x24   :  { %273 = vmatpush.xpose.msk.msra.mxu1 %vm36_vm0, %v146_v17 }
  0x26   :  { %300 = vmatpush.xpose.msk.msra.mxu2 %vm36_vm0, %v21_v18  ;;  %301 = vmatpush.xpose.msk.msra.mxu3 %vm36_vm0, %v21_v18 }
  0x27   :  { %254 = vmatpush.xpose.msk.msra.mxu0 %vm36_vm0, %v21_v18 }
  0x28   :  { %274 = vmatpush.xpose.msk.msra.mxu1 %vm36_vm0, %v145_v19 }
  0x2a   :  { %302 = vmatpush.xpose.msk.msra.mxu2 %vm36_vm0, %v20_v20  ;;  %303 = vmatpush.xpose.msk.msra.mxu3 %vm36_vm0, %v20_v20 }
  0x2b   :  { %255 = vmatpush.xpose.msk.msra.mxu0 %vm36_vm0, %v20_v20 }
  0x2c   :  { %275 = vmatpush.xpose.msk.msra.mxu1 %vm36_vm0, %v144_v21 }
  0x2e   :  { %304 = vmatpush.xpose.msk.msra.mxu2 %vm36_vm0, %v19_v22  ;;  %305 = vmatpush.xpose.msk.msra.mxu3 %vm36_vm0, %v19_v22 }
  0x2f   :  { %256 = vmatpush.xpose.msk.msra.mxu0 %vm36_vm0, %v19_v22 }
  0x30   :  { %276 = vmatpush.xpose.msk.msra.mxu1 %vm36_vm0, %v143_v23 }
  0x32   :  { %306 = vmatpush.xpose.msk.msra.mxu2 %vm36_vm0, %v18_v24  ;;  %307 = vmatpush.xpose.msk.msra.mxu3 %vm36_vm0, %v18_v24 }
  0x33   :  { %257 = vmatpush.xpose.msk.msra.mxu0 %vm36_vm0, %v18_v24 }
  0x34   :  { %277 = vmatpush.xpose.msk.msra.mxu1 %vm36_vm0, %v142_v25 }
  0x36   :  { %308 = vmatpush.xpose.msk.msra.mxu2 %vm36_vm0, %v17_v26  ;;  %309 = vmatpush.xpose.msk.msra.mxu3 %vm36_vm0, %v17_v26 }
  0x37   :  { %258 = vmatpush.xpose.msk.msra.mxu0 %vm36_vm0, %v17_v26 }
  0x38   :  { %278 = vmatpush.xpose.msk.msra.mxu1 %vm36_vm0, %v141_v27 }
  0x3a   :  { %310 = vmatpush.xpose.msk.msra.mxu2 %vm36_vm0, %v16_v28  ;;  %311 = vmatpush.xpose.msk.msra.mxu3 %vm36_vm0, %v16_v28 }
  0x3b   :  { %259 = vmatpush.xpose.msk.msra.mxu0 %vm36_vm0, %v16_v28 }
  0x3c   :  { %279 = vmatpush.xpose.msk.msra.mxu1 %vm36_vm0, %v140_v29 }
  0x3e   :  { %312 = vmatpush.xpose.msk.msra.mxu2 %vm36_vm0, %v15_v30  ;;  %313 = vmatpush.xpose.msk.msra.mxu3 %vm36_vm0, %v15_v30 }
  0x3f   :  { %260 = vmatpush.xpose.msk.msra.mxu0 %vm36_vm0, %v15_v30 }
  0x40   :  { %280 = vmatpush.xpose.msk.msra.mxu1 %vm36_vm0, %v139_v31 }
  0x41   :  { %262 = vmatmul.msk.f32.vlgmr.msra.gmra.mxu2 %vm36_vm0, %v32_v32  ;;  %263 = vmatmul.msk.f32.vlgmr.msra.gmra.mxu3 %vm36_vm0, %v33_v33 }
  0x42   :  { %261 = vmatmul.msk.f32.vlgmr.msra.gmra.mxu0 %vm36_vm0, %v31_v34 }
  0x43   :  { %281 = vmatmul.msk.f32.vlgmr.msra.gmra.mxu1 %vm36_vm0, %v35_v35 }
  0x49   :  { %264 = vmatmul.msk.f32.gmra.mxu3 %vm36_vm0, %v34_v36 }
  0xbf   :  { %v114_v37 = vpop.f32.mrf.mxu0 }
  0xc0   :  { %v126_v40 = vmul.f32 %v114_v37, %v114_v37  ;;  %v223_v53 = vpop.f32.mrf.mxu1 }
  0xc4   :  { %v117_v38 = vpop.f32.mrf.mxu2  ;;  %v120_v39 = vpop.f32.mrf.mxu3 }
  0xc5   :  { %v127_v41 = vmul.f32 %v117_v38, %v117_v38  ;;  %v128_v43 = vmul.f32 %v120_v39, %v120_v39 }
  0xc7   :  { %v130_v42 = vadd.f32 %v127_v41, %v126_v40 }
  0xc9   :  { %v131_v45 = vadd.f32 %v130_v42, %v128_v43 }
  0xcc   :  { %v123_v44 = vpop.f32.mrf.mxu3 }
  0xcd   :  { %v129_v46 = vmul.f32 %v123_v44, %v123_v44 }
  0xcf   :  { %v132_v47 = vadd.f32 %v131_v45, %v129_v46 }
  0xd1   :  { %v133_v48 = vrot.slane %v132_v47, 4 }
  0xd3   :  { %v134_v49 = vadd.f32 %v133_v48, %v132_v47 }
  0xd5   :  { %v135_v50 = vrot.slane %v134_v49, 2 }
  0xd7   :  { %v136_v51 = vadd.f32 %v135_v50, %v134_v49 }
  0xd9   :  { %v137_v52 = vrot.slane %v136_v51, 1 }
  0xdb   :  { %v138_v54 = vadd.f32 %v137_v52, %v136_v51 }
  0xdd   :  { %v226_v55 = vsub.f32 %v138_v54, %v223_v53 }
  0xdf   :  { %v227_v56 = vmul.f32 0.5, %v226_v55 }
  0xe1   :  { %228 = vst [vmem:[#allocation2] sm:$0x1] %v227_v56 }
  0xe2   :  { %239 = dma.vmem_to_hbm [thread:$0]  %s235_s2, 16, %s237_s28, [#allocation3]  }
  0xe3   :  { %339 = dma.done.wait [#allocation3], 16  }
  0xe4   :  { %340 = vsyncadd [#allocation3], 4294967280 }
  0xe5   :  { %244 = vsyncpa [#allocation3], 1 }

</bundles_post_ra>
